<compile_context>
chip_gen: v5e
topology: v5e:2x2
jax: 0.10.0
libtpu: 0.0.40
codegen_flags: <defaults>
</compile_context>

<pallas_src>
import functools

import jax
import jax.numpy as jnp
from jax.experimental import pallas as pl
from jax.experimental.pallas import tpu as pltpu

LANE = 128


def _round_up(x, m):
    return (x + m - 1) // m * m


def _sublane(dtype):
    # second-minor tiling requirement per element width
    return {4: 8, 2: 16, 1: 32}[jnp.dtype(dtype).itemsize]


def _choose_tile_b(b_padded, sublane):
    """Largest 'nice' batch tile that still yields >= 2 grid steps (megacore on v7x)."""
    if b_padded <= sublane:
        return b_padded
    for cand in (1024, 512, 256, 128, 64, 32, 16, 8):
        if cand >= sublane and cand <= b_padded // 2 and b_padded % cand == 0:
            return cand
    return b_padded


def _pad2(x, rows, cols, dtype):
    x = x.astype(dtype)
    return jnp.pad(x, ((0, rows - x.shape[0]), (0, cols - x.shape[1])))


def odenet_kernel(y_ref, w1_ref, b1_ref, w2_ref, b2_ref, w3_ref, b3_ref, o_ref):
    # Layer 1: Linear + Tanh  (MXU matmul, f32 accumulation, f32 tanh)
    h1 = jnp.tanh(
        jnp.dot(y_ref[...], w1_ref[...], preferred_element_type=jnp.float32)
        + b1_ref[...]
    ).astype(w2_ref.dtype)
    # Layer 2: Linear + Tanh
    h2 = jnp.tanh(
        jnp.dot(h1, w2_ref[...], preferred_element_type=jnp.float32)
        + b2_ref[...]
    ).astype(w3_ref.dtype)
    # Layer 3: Linear (no activation)
    out = (
        jnp.dot(h2, w3_ref[...], preferred_element_type=jnp.float32)
        + b3_ref[...]
    )
    o_ref[...] = out.astype(o_ref.dtype)


@functools.partial(jax.jit, static_argnames=("tile_b", "compute_dtype"))
def odenet_forward(y, params, *, tile_b=None, compute_dtype=None):
    """y: (B, n_features). params: dict of w1,b1 (in,out layout), w2,b2, w3,b3."""
    B, F = y.shape
    H = params["w1"].shape[1]
    out_dtype = y.dtype
    cdt = jnp.dtype(compute_dtype) if compute_dtype is not None else jnp.dtype(y.dtype)

    sub = _sublane(cdt)
    Fp = max(LANE, _round_up(F, LANE))          # lane-dense K for layer 1
    Hp = max(LANE, _round_up(H, LANE))          # lane-dense hidden / output dim
    Bp = _round_up(B, sub)

    if tile_b is None:
        tile_b = _choose_tile_b(Bp, sub)
    assert tile_b % sub == 0, f"tile_b={tile_b} must be a multiple of {sub} for {cdt}"
    assert Bp % tile_b == 0

    # Zero-padding preserves the first H output columns exactly:
    # padded hidden units get bias 0 -> tanh(0) = 0, and padded weight rows are 0.
    yp = _pad2(y, Bp, Fp, cdt)
    w1 = _pad2(params["w1"], Fp, Hp, cdt)
    w2 = _pad2(params["w2"], Hp, Hp, cdt)
    w3 = _pad2(params["w3"], Hp, Hp, cdt)
    b1 = _pad2(params["b1"], 1, Hp, jnp.float32)   # biases stay f32 (added post-accum)
    b2 = _pad2(params["b2"], 1, Hp, jnp.float32)
    b3 = _pad2(params["b3"], 1, Hp, jnp.float32)

    grid = (Bp // tile_b,)

    in_specs = [
        pl.BlockSpec((tile_b, Fp), lambda i: (i, 0)),   # y (batch-tiled)
        pl.BlockSpec((Fp, Hp), lambda i: (0, 0)),       # w1 (resident)
        pl.BlockSpec((1, Hp), lambda i: (0, 0)),        # b1
        pl.BlockSpec((Hp, Hp), lambda i: (0, 0)),       # w2
        pl.BlockSpec((1, Hp), lambda i: (0, 0)),        # b2
        pl.BlockSpec((Hp, Hp), lambda i: (0, 0)),       # w3
        pl.BlockSpec((1, Hp), lambda i: (0, 0)),        # b3
    ]
    out_specs = pl.BlockSpec((tile_b, Hp), lambda i: (i, 0))

    # Advisory cost estimate so XLA can schedule surrounding solver ops around us.
    itemsize = cdt.itemsize
    flops = 2 * Bp * (Fp * Hp + 2 * Hp * Hp)
    transcendentals = 2 * Bp * Hp                       # two tanh layers
    bytes_accessed = (
        Bp * Fp * itemsize                              # input
        + (Fp * Hp + 2 * Hp * Hp) * itemsize            # weights
        + 3 * Hp * 4                                    # biases (f32)
        + Bp * Hp * 4                                   # output (f32)
    )
    cost = pl.CostEstimate(
        flops=flops, transcendentals=transcendentals, bytes_accessed=bytes_accessed
    )

    # VMEM budget: double-buffered activation tiles + resident (double-buffered)
    # weights + headroom.  Clamp to v7x's 64 MiB physical VMEM.
    act_bytes = tile_b * Fp * itemsize + tile_b * Hp * 4
    w_bytes = (Fp * Hp + 2 * Hp * Hp) * itemsize + 3 * Hp * 4
    vmem_limit = int(min(64 << 20, max(32 << 20, 2 * (act_bytes + w_bytes) + (4 << 20))))

    out_padded = pl.pallas_call(
        odenet_kernel,
        out_shape=jax.ShapeDtypeStruct((Bp, Hp), jnp.float32),
        grid_spec=pltpu.PrefetchScalarGridSpec(
            num_scalar_prefetch=0,
            grid=grid,
            in_specs=in_specs,
            out_specs=out_specs,
        ),
        compiler_params=pltpu.CompilerParams(
            dimension_semantics=("parallel",),          # batch axis shards across TCs on v7x
            vmem_limit_bytes=vmem_limit,
        ),
        cost_estimate=cost,
    )(yp, w1, b1, w2, b2, w3, b3)

    # Slice away batch/lane padding outside the kernel (kernel store stays lane-dense).
    return out_padded[:B, :H].astype(out_dtype)


def init_params(key, n_features, n_hidden, dtype=jnp.float32):
    """Deterministic init mirroring nn.Linear shapes (weights stored transposed: (in, out))."""
    ks = jax.random.split(key, 6)

    def uniform(k, shape, fan_in):
        bound = 1.0 / jnp.sqrt(fan_in)
        return jax.random.uniform(k, shape, dtype, minval=-bound, maxval=bound)

    return {
        "w1": uniform(ks[0], (n_features, n_hidden), n_features),
        "b1": uniform(ks[1], (1, n_hidden), n_features),
        "w2": uniform(ks[2], (n_hidden, n_hidden), n_hidden),
        "b2": uniform(ks[3], (1, n_hidden), n_hidden),
        "w3": uniform(ks[4], (n_hidden, n_hidden), n_hidden),
        "b3": uniform(ks[5], (1, n_hidden), n_hidden),
    }


def odenet_ref(y, p):
    h1 = jnp.tanh(y @ p["w1"] + p["b1"])
    h2 = jnp.tanh(h1 @ p["w2"] + p["b2"])
    return h2 @ p["w3"] + p["b3"]


if __name__ == "__main__":
    key = jax.random.PRNGKey(0)
    k_params, k_y = jax.random.split(key)

    B, n_features, n_hidden = 8, 16, 32
    params = init_params(k_params, n_features, n_hidden)
    y = jax.random.normal(k_y, (B, n_features), dtype=jnp.float32)

    # f32 path (exact vs reference)
    out = jax.block_until_ready(odenet_forward(y, params))
    ref = odenet_ref(y, params)
    assert out.shape == (B, n_hidden)
    assert jnp.allclose(out, ref, atol=1e-5, rtol=1e-5)

    # bf16 compute path (MXU-friendly on v6e/v7x), f32 accumulation — looser tolerance
    out_bf16 = jax.block_until_ready(odenet_forward(y, params, compute_dtype=jnp.bfloat16))
    assert out_bf16.shape == (B, n_hidden)
    assert jnp.allclose(out_bf16, ref, atol=1e-1, rtol=0.0)

    # Larger batch: exercises multi-tile grid (pipelined activation tiles, 2-TC split on v7x)
    yb = jax.random.normal(k_y, (512, n_features), dtype=jnp.float32)
    outb = jax.block_until_ready(odenet_forward(yb, params))
    assert outb.shape == (512, n_hidden)
    assert jnp.allclose(outb, odenet_ref(yb, params), atol=1e-5, rtol=1e-5)

    print("KERNEL_OK")
</pallas_src>

<mosaic_0001>
module attributes {stable_mosaic.version = 11 : i64} {
  func.func @odenet_kernel(%arg0: i32, %arg1: memref<8x128xf32, #tpu.memory_space<vmem>>, %arg2: memref<128x128xf32, #tpu.memory_space<vmem>>, %arg3: memref<1x128xf32, #tpu.memory_space<vmem>>, %arg4: memref<128x128xf32, #tpu.memory_space<vmem>>, %arg5: memref<1x128xf32, #tpu.memory_space<vmem>>, %arg6: memref<128x128xf32, #tpu.memory_space<vmem>>, %arg7: memref<1x128xf32, #tpu.memory_space<vmem>>, %arg8: memref<8x128xf32, #tpu.memory_space<vmem>>) attributes {dimension_semantics = [#tpu.dimension_semantics<parallel>], iteration_bounds = array<i64: 1>, scalar_prefetch = 0 : i64, scratch_operands = 0 : i64, tpu.core_type = #tpu.core_type<tc>, window_params = [{transform_indices = @transform_0, window_bounds = array<i64: 8, 128>}, {pipeline_mode = #tpu.pipeline_mode<synchronous>, transform_indices = @transform_1, window_bounds = array<i64: 128, 128>}, {pipeline_mode = #tpu.pipeline_mode<synchronous>, transform_indices = @transform_2, window_bounds = array<i64: 1, 128>}, {pipeline_mode = #tpu.pipeline_mode<synchronous>, transform_indices = @transform_3, window_bounds = array<i64: 128, 128>}, {pipeline_mode = #tpu.pipeline_mode<synchronous>, transform_indices = @transform_4, window_bounds = array<i64: 1, 128>}, {pipeline_mode = #tpu.pipeline_mode<synchronous>, transform_indices = @transform_5, window_bounds = array<i64: 128, 128>}, {pipeline_mode = #tpu.pipeline_mode<synchronous>, transform_indices = @transform_6, window_bounds = array<i64: 1, 128>}, {transform_indices = @transform_7, window_bounds = array<i64: 8, 128>}]} {
    %c0 = arith.constant 0 : index
    %c0_0 = arith.constant 0 : index
    %0 = vector.load %arg1[%c0, %c0_0] : memref<8x128xf32, #tpu.memory_space<vmem>>, vector<8x128xf32>
    %c0_1 = arith.constant 0 : index
    %c0_2 = arith.constant 0 : index
    %1 = vector.load %arg2[%c0_1, %c0_2] : memref<128x128xf32, #tpu.memory_space<vmem>>, vector<128x128xf32>
    %cst = arith.constant dense<0.000000e+00> : vector<8x128xf32>
    %2 = tpu.matmul %0, %1, %cst {dimension_numbers = #tpu.dot_dimension_numbers<[1], [0], [0], [1], [0, 0, 1, 1], [], []>} : vector<8x128xf32>, vector<128x128xf32>, vector<8x128xf32> -> vector<8x128xf32>
    %c0_3 = arith.constant 0 : index
    %c0_4 = arith.constant 0 : index
    %3 = vector.load %arg3[%c0_3, %c0_4] : memref<1x128xf32, #tpu.memory_space<vmem>>, vector<1x128xf32>
    %4 = vector.broadcast %3 : vector<1x128xf32> to vector<8x128xf32>
    %5 = arith.addf %2, %4 : vector<8x128xf32>
    %6 = math.tanh %5 : vector<8x128xf32>
    %c0_5 = arith.constant 0 : index
    %c0_6 = arith.constant 0 : index
    %7 = vector.load %arg4[%c0_5, %c0_6] : memref<128x128xf32, #tpu.memory_space<vmem>>, vector<128x128xf32>
    %cst_7 = arith.constant dense<0.000000e+00> : vector<8x128xf32>
    %8 = tpu.matmul %6, %7, %cst_7 {dimension_numbers = #tpu.dot_dimension_numbers<[1], [0], [0], [1], [0, 0, 1, 1], [], []>} : vector<8x128xf32>, vector<128x128xf32>, vector<8x128xf32> -> vector<8x128xf32>
    %c0_8 = arith.constant 0 : index
    %c0_9 = arith.constant 0 : index
    %9 = vector.load %arg5[%c0_8, %c0_9] : memref<1x128xf32, #tpu.memory_space<vmem>>, vector<1x128xf32>
    %10 = vector.broadcast %9 : vector<1x128xf32> to vector<8x128xf32>
    %11 = arith.addf %8, %10 : vector<8x128xf32>
    %12 = math.tanh %11 : vector<8x128xf32>
    %c0_10 = arith.constant 0 : index
    %c0_11 = arith.constant 0 : index
    %13 = vector.load %arg6[%c0_10, %c0_11] : memref<128x128xf32, #tpu.memory_space<vmem>>, vector<128x128xf32>
    %cst_12 = arith.constant dense<0.000000e+00> : vector<8x128xf32>
    %14 = tpu.matmul %12, %13, %cst_12 {dimension_numbers = #tpu.dot_dimension_numbers<[1], [0], [0], [1], [0, 0, 1, 1], [], []>} : vector<8x128xf32>, vector<128x128xf32>, vector<8x128xf32> -> vector<8x128xf32>
    %c0_13 = arith.constant 0 : index
    %c0_14 = arith.constant 0 : index
    %15 = vector.load %arg7[%c0_13, %c0_14] : memref<1x128xf32, #tpu.memory_space<vmem>>, vector<1x128xf32>
    %16 = vector.broadcast %15 : vector<1x128xf32> to vector<8x128xf32>
    %17 = arith.addf %14, %16 : vector<8x128xf32>
    %c0_15 = arith.constant 0 : index
    %c0_16 = arith.constant 0 : index
    %18 = vector.load %arg8[%c0_15, %c0_16] : memref<8x128xf32, #tpu.memory_space<vmem>>, vector<8x128xf32>
    tpu.vector_store %arg8[%c0_15, %c0_16], %17 {strides = array<i32>} : memref<8x128xf32, #tpu.memory_space<vmem>>, vector<8x128xf32>,
    return
  }
  func.func @transform_0(%arg0: i32) -> (i32, i32) {
    %c0_i32 = arith.constant 0 : i32
    %c0_i32_0 = arith.constant 0 : i32
    return %arg0, %c0_i32 : i32, i32
  }
  func.func @transform_1(%arg0: i32) -> (i32, i32) {
    %c0_i32 = arith.constant 0 : i32
    %c0_i32_0 = arith.constant 0 : i32
    %c0_i32_1 = arith.constant 0 : i32
    return %c0_i32, %c0_i32_0 : i32, i32
  }
  func.func @transform_2(%arg0: i32) -> (i32, i32) {
    %c0_i32 = arith.constant 0 : i32
    %c0_i32_0 = arith.constant 0 : i32
    %c0_i32_1 = arith.constant 0 : i32
    return %c0_i32, %c0_i32_0 : i32, i32
  }
  func.func @transform_3(%arg0: i32) -> (i32, i32) {
    %c0_i32 = arith.constant 0 : i32
    %c0_i32_0 = arith.constant 0 : i32
    %c0_i32_1 = arith.constant 0 : i32
    return %c0_i32, %c0_i32_0 : i32, i32
  }
  func.func @transform_4(%arg0: i32) -> (i32, i32) {
    %c0_i32 = arith.constant 0 : i32
    %c0_i32_0 = arith.constant 0 : i32
    %c0_i32_1 = arith.constant 0 : i32
    return %c0_i32, %c0_i32_0 : i32, i32
  }
  func.func @transform_5(%arg0: i32) -> (i32, i32) {
    %c0_i32 = arith.constant 0 : i32
    %c0_i32_0 = arith.constant 0 : i32
    %c0_i32_1 = arith.constant 0 : i32
    return %c0_i32, %c0_i32_0 : i32, i32
  }
  func.func @transform_6(%arg0: i32) -> (i32, i32) {
    %c0_i32 = arith.constant 0 : i32
    %c0_i32_0 = arith.constant 0 : i32
    %c0_i32_1 = arith.constant 0 : i32
    return %c0_i32, %c0_i32_0 : i32, i32
  }
  func.func @transform_7(%arg0: i32) -> (i32, i32) {
    %c0_i32 = arith.constant 0 : i32
    %c0_i32_0 = arith.constant 0 : i32
    return %arg0, %c0_i32 : i32, i32
  }
}

</mosaic_0001>

<bundles_post_ra>
// kernel: odenet_forward.1
= control target key start
LH: loop header
LB: loop body
LE: loop exit
PB: predicated region body
PF: predicated region fallthrough
CT: control target
= control target key end

     0   :  { %s401_s0 = inlined_call_operand.vmem [shape: f32[8,128], index: 0, kind: input, shape index: {}]   ;;  %s402_s1 = inlined_call_operand.vmem [shape: f32[128,128], index: 1, kind: input, shape index: {}]   ;;  %s403_s2 = inlined_call_operand.vmem [shape: f32[1,128], index: 2, kind: input, shape index: {}]   ;;  %s404_s3 = inlined_call_operand.vmem [shape: f32[128,128], index: 3, kind: input, shape index: {}]   ;;  %s405_s4 = inlined_call_operand.vmem [shape: f32[1,128], index: 4, kind: input, shape index: {}]   ;;  %s406_s5 = inlined_call_operand.vmem [shape: f32[128,128], index: 5, kind: input, shape index: {}]   ;;  %s407_s6 = inlined_call_operand.vmem [shape: f32[1,128], index: 6, kind: input, shape index: {}]   ;;  %s408_s7 = inlined_call_operand.hbm [shape: f32[8,128], index: 7, kind: output, shape index: {}]  }
   0x1   :  { %v43_v0 = vld [vmem:[%s402_s1 + $0x78] sm:$0xff]  ;;  %v42_v1 = vld [vmem:[%s402_s1 + $0x70] sm:$0xff]  ;;  %v41_v2 = vld [vmem:[%s402_s1 + $0x68] sm:$0xff] }
   0x2   :  { %48 = vmatpush.msra.mxu0 %v43_v0  ;;  %v40_v3 = vld [vmem:[%s402_s1 + $0x60] sm:$0xff]  ;;  %v84_v4 = vld [vmem:[%s404_s3 + $0x78] sm:$0xff]  ;;  %v83_v6 = vld [vmem:[%s404_s3 + $0x70] sm:$0xff] }
   0x3   :  { %v39_v5 = vld [vmem:[%s402_s1 + $0x58] sm:$0xff]  ;;  %89 = vmatpush.msra.mxu1 %v84_v4  ;;  %v82_v7 = vld [vmem:[%s404_s3 + $0x68] sm:$0xff]  ;;  %v38_v8 = vld [vmem:[%s402_s1 + $0x50] sm:$0xff] }
   0x4   :  { %49 = vmatpush.msra.mxu0 %v42_v1  ;;  %v37_v9 = vld [vmem:[%s402_s1 + $0x48] sm:$0xff]  ;;  %v81_v10 = vld [vmem:[%s404_s3 + $0x60] sm:$0xff] }
   0x5   :  { %90 = vmatpush.msra.mxu1 %v83_v6 }
   0x6   :  { %50 = vmatpush.msra.mxu0 %v41_v2 }
   0x7   :  { %91 = vmatpush.msra.mxu1 %v82_v7 }
   0x8   :  { %51 = vmatpush.msra.mxu0 %v40_v3 }
   0xa   :  { %52 = vmatpush.msra.mxu0 %v39_v5 }
   0xb   :  { %12 = vsyncpa [#allocation3], 0  ;;  %v80_v11 = vld [vmem:[%s404_s3 + $0x58] sm:$0xff]  ;;  %v36_v12 = vld [vmem:[%s402_s1 + $0x40] sm:$0xff]  ;;  %92 = vmatpush.msra.mxu1 %v81_v10  ;;  %s201_s29 = smov [#allocation2]  }
   0xc   :  { %53 = vmatpush.msra.mxu0 %v38_v8  ;;  %v79_v13 = vld [vmem:[%s404_s3 + $0x50] sm:$0xff]  ;;  %v35_v14 = vld [vmem:[%s402_s1 + $0x38] sm:$0xff]  ;;  %v78_v15 = vld [vmem:[%s404_s3 + $0x48] sm:$0xff]  ;;  %s156_s30 = sshll.u32 %s201_s29, 4  ;;  %s157_s30 = int_to_ptr.vmem [resolvable:$true] %s156_s30 }
   0xd   :  { %93 = vmatpush.msra.mxu1 %v80_v11  ;;  %v34_v16 = vld [vmem:[%s402_s1 + $0x30] sm:$0xff]  ;;  %v77_v17 = vld [vmem:[%s404_s3 + $0x40] sm:$0xff]  ;;  %v33_v18 = vld [vmem:[%s402_s1 + $0x28] sm:$0xff] }
   0xe   :  { %54 = vmatpush.msra.mxu0 %v37_v9  ;;  %v76_v19 = vld [vmem:[%s404_s3 + $0x38] sm:$0xff]  ;;  %v32_v20 = vld [vmem:[%s402_s1 + $0x20] sm:$0xff]  ;;  %v75_v21 = vld [vmem:[%s404_s3 + $0x30] sm:$0xff] }
   0xf   :  { %94 = vmatpush.msra.mxu1 %v79_v13  ;;  %v31_v22 = vld [vmem:[%s402_s1 + $0x18] sm:$0xff]  ;;  %v74_v23 = vld [vmem:[%s404_s3 + $0x28] sm:$0xff]  ;;  %v30_v24 = vld [vmem:[%s402_s1 + $0x10] sm:$0xff] }
  0x10   :  { %55 = vmatpush.msra.mxu0 %v36_v12  ;;  %v29_v25 = vld [vmem:[%s402_s1 + $0x8] sm:$0xff]  ;;  %v28_v26 = vld [vmem:[%s402_s1] sm:$0xff]  ;;  %v72_v29 = vld [vmem:[%s404_s3 + $0x18] sm:$0xff] }
  0x11   :  { %95 = vmatpush.msra.mxu1 %v78_v15  ;;  %v27_v27 = vld [vmem:[%s401_s0] sm:$0xff]  ;;  %v71_v30 = vld [vmem:[%s404_s3 + $0x10] sm:$0xff]  ;;  %v70_v31 = vld [vmem:[%s404_s3 + $0x8] sm:$0xff] }
  0x12   :  { %56 = vmatpush.msra.mxu0 %v35_v14  ;;  %v73_v28 = vld [vmem:[%s404_s3 + $0x20] sm:$0xff]  ;;  %v125_v33 = vld [vmem:[%s406_s5 + $0x78] sm:$0xff]  ;;  %v124_v34 = vld [vmem:[%s406_s5 + $0x70] sm:$0xff] }
  0x13   :  { %96 = vmatpush.msra.mxu1 %v77_v17  ;;  %v69_v32 = vld [vmem:[%s404_s3] sm:$0xff]  ;;  %130 = vmatpush.msra.mxu2 %v125_v33  ;;  %v123_v35 = vld [vmem:[%s406_s5 + $0x68] sm:$0xff]  ;;  %v121_v37 = vld [vmem:[%s406_s5 + $0x58] sm:$0xff] }
  0x14   :  { %57 = vmatpush.msra.mxu0 %v34_v16  ;;  %v122_v36 = vld [vmem:[%s406_s5 + $0x60] sm:$0xff]  ;;  %v120_v38 = vld [vmem:[%s406_s5 + $0x50] sm:$0xff]  ;;  %v119_v39 = vld [vmem:[%s406_s5 + $0x48] sm:$0xff] }
  0x15   :  { %97 = vmatpush.msra.mxu1 %v76_v19  ;;  %131 = vmatpush.msra.mxu2 %v124_v34  ;;  %v118_v40 = vld [vmem:[%s406_s5 + $0x40] sm:$0xff]  ;;  %v117_v41 = vld [vmem:[%s406_s5 + $0x38] sm:$0xff]  ;;  %v116_v42 = vld [vmem:[%s406_s5 + $0x30] sm:$0xff] }
  0x16   :  { %58 = vmatpush.msra.mxu0 %v33_v18  ;;  %v115_v43 = vld [vmem:[%s406_s5 + $0x28] sm:$0xff]  ;;  %v168_v44 = vld [vmem:[%s403_s2] ss:$0 sm:$0xff]  ;;  %v113_v49 = vld [vmem:[%s406_s5 + $0x18] sm:$0xff] }
  0x17   :  { %98 = vmatpush.msra.mxu1 %v75_v21  ;;  %132 = vmatpush.msra.mxu2 %v123_v35  ;;  %v114_v48 = vld [vmem:[%s406_s5 + $0x20] sm:$0xff]  ;;  %v112_v50 = vld [vmem:[%s406_s5 + $0x10] sm:$0xff]  ;;  %v111_v51 = vld [vmem:[%s406_s5 + $0x8] sm:$0xff] }
  0x18   :  { %59 = vmatpush.msra.mxu0 %v32_v20  ;;  %v110_v52 = vld [vmem:[%s406_s5] sm:$0xff]  ;;  %s158_s5 = sshll.u32 %s408_s7, 4  ;;  %s159_s5 = int_to_ptr.hbm [resolvable:$true] %s158_s5 }
  0x19   :  { %99 = vmatpush.msra.mxu1 %v74_v23  ;;  %133 = vmatpush.msra.mxu2 %v122_v36  ;;  %v169_v53 = vld [vmem:[%s405_s4] ss:$0 sm:$0xff] }
  0x1a   :  { %60 = vmatpush.msra.mxu0 %v31_v22  ;;  %v170_v57 = vld [vmem:[%s407_s6] ss:$0 sm:$0xff] }
  0x1b   :  { %100 = vmatpush.msra.mxu1 %v73_v28  ;;  %134 = vmatpush.msra.mxu2 %v121_v37 }
  0x1c   :  { %61 = vmatpush.msra.mxu0 %v30_v24 }
  0x1d   :  { %101 = vmatpush.msra.mxu1 %v72_v29  ;;  %135 = vmatpush.msra.mxu2 %v120_v38 }
  0x1e   :  { %62 = vmatpush.msra.mxu0 %v29_v25 }
  0x1f   :  { %102 = vmatpush.msra.mxu1 %v71_v30  ;;  %136 = vmatpush.msra.mxu2 %v119_v39 }
  0x20   :  { %63 = vmatpush.msra.mxu0 %v28_v26 }
  0x21   :  { %64 = vmatmul.f32.vlgmr.msra.gmra.mxu0 %v27_v27  ;;  %103 = vmatpush.msra.mxu1 %v70_v31 }
  0x22   :  { %137 = vmatpush.msra.mxu2 %v118_v40 }
  0x23   :  { %104 = vmatpush.msra.mxu1 %v69_v32 }
  0x24   :  { %138 = vmatpush.msra.mxu2 %v117_v41 }
  0x26   :  { %139 = vmatpush.msra.mxu2 %v116_v42 }
  0x28   :  { %140 = vmatpush.msra.mxu2 %v115_v43 }
  0x2a   :  { %141 = vmatpush.msra.mxu2 %v114_v48 }
  0x2c   :  { %142 = vmatpush.msra.mxu2 %v113_v49 }
  0x2e   :  { %143 = vmatpush.msra.mxu2 %v112_v50 }
  0x30   :  { %144 = vmatpush.msra.mxu2 %v111_v51 }
  0x32   :  { %145 = vmatpush.msra.mxu2 %v110_v52 }
  0x9e   :  { %v65_v45 = vpop.f32.mrf.mxu0 }
  0x9f   :  { %v66_v46 = vadd.f32 %v168_v44, %v65_v45 }
  0xa1   :  { %171 = vtanh.f32 %v66_v46 }
  0xa7   :  { %v172_v47 = vpop.eup %171 }
  0xa8   :  { %105 = vmatmul.f32.vlgmr.msra.gmra.mxu1 %v172_v47 }
 0x125   :  { %v106_v54 = vpop.f32.mrf.mxu1 }
 0x126   :  { %v107_v55 = vadd.f32 %v169_v53, %v106_v54 }
 0x128   :  { %173 = vtanh.f32 %v107_v55 }
 0x12e   :  { %v174_v56 = vpop.eup %173 }
 0x12f   :  { %146 = vmatmul.f32.vlgmr.msra.gmra.mxu2 %v174_v56 }
 0x1b2   :  { %v147_v58 = vpop.f32.mrf.mxu2 }
 0x1b3   :  { %v148_v59 = vadd.f32 %v170_v57, %v147_v58 }
 0x1b5   :  { %150 = vst [vmem:[#allocation2] sm:$0xff] %v148_v59 }
 0x1b6   :  { %161 = dma.vmem_to_hbm [thread:$0]  %s157_s30, 128, %s159_s5, [#allocation3]  }
 0x1b7   :  { %199 = dma.done.wait [#allocation3], 128  }
 0x1b8   :  { %200 = vsyncadd [#allocation3], 4294967168 }
 0x1b9   :  { %166 = vsyncpa [#allocation3], 1 }

</bundles_post_ra>
